<compile_context>
chip_gen: v6e
topology: v6e:2x2x1
jax: 0.10.0
libtpu: 0.0.40
codegen_flags: <defaults>
</compile_context>

<pallas_src>
import jax
import jax.numpy as jnp
from jax.experimental import pallas as pl
from jax.experimental.pallas import tpu as pltpu

NEG_SLOPE = 0.01     # PyTorch nn.LeakyReLU default
LANES = 128
IN_DIM = 6
HID = 50
OUT_DIM = 1

# ---- packed-parameter row layout (rows of the (144, 128) f32 buffer) -------
_W1_LO = 0                    # W1: rows 0..5 used (in-features), lanes 0..49 (out)
_W2_LO, _W2_HI = 8, 136       # W2: 128 tile-aligned rows, rows 8..57 / lanes 0..49 used
_B1_ROW = 136                 # b1 on lanes 0..49
_B2_ROW = 137                 # b2 on lanes 0..49
_W3_ROW = 138                 # W3 (50->1) flattened to a row, lanes 0..49
_B3_ROW = 139                 # b3 scalar (lane 0; replicated for robustness)
_PACK_ROWS = 144              # multiple of 8 sublanes


def _leaky(v):
    return jnp.where(v >= 0, v, NEG_SLOPE * v)


def mlp_kernel(x_ref, p_ref, o_ref):
    x = x_ref[...]                                   # (B, 6)

    w1 = p_ref[_W1_LO:_W1_LO + IN_DIM, :]            # (6, 128)   rows 0..5 of tile 0
    w2 = p_ref[_W2_LO:_W2_HI, :]                     # (128, 128) tile-aligned slice
    b1 = p_ref[_B1_ROW:_B1_ROW + 1, :]               # (1, 128)
    b2 = p_ref[_B2_ROW:_B2_ROW + 1, :]               # (1, 128)
    w3r = p_ref[_W3_ROW:_W3_ROW + 1, :]              # (1, 128)
    b3 = p_ref[_B3_ROW:_B3_ROW + 1, 0:1]             # (1, 1)

    # Layer 1: tiny-K MXU matmul (Mosaic pads K=6 internally).  Lanes 50..127
    # of the pre-activation are 0 + 0 -> stay exactly 0 through LeakyReLU.
    h1 = _leaky(jnp.dot(x, w1, preferred_element_type=jnp.float32) + b1)     # (B, 128)
    # Layer 2: K=128 matmul; W2 rows/lanes >= 50 are zero, so padding is exact.
    h2 = _leaky(jnp.dot(h1, w2, preferred_element_type=jnp.float32) + b2)    # (B, 128)

    # Layer 3 (50 -> 1): VPU multiply + XLU cross-lane reduce instead of a
    # 1-wide MXU matmul; w3 lanes 50..127 are zero.
    s = jnp.sum(h2 * w3r, axis=-1, keepdims=True)                            # (B, 1)
    o_ref[...] = _leaky(s + b3)                                              # (B, 1)


def pack_params(params):
    """Pack (w1,b1,w2,b2,w3,b3) once into a lane-dense (144, 128) f32 buffer."""
    w1, b1 = params["w1"], params["b1"]   # (6, 50), (1, 50)
    w2, b2 = params["w2"], params["b2"]   # (50, 50), (1, 50)
    w3, b3 = params["w3"], params["b3"]   # (50, 1), (1, 1)

    p = jnp.zeros((_PACK_ROWS, LANES), jnp.float32)
    p = p.at[_W1_LO:_W1_LO + w1.shape[0], : w1.shape[1]].set(w1)
    p = p.at[_W2_LO:_W2_LO + w2.shape[0], : w2.shape[1]].set(w2)
    p = p.at[_B1_ROW, : b1.shape[1]].set(b1[0])
    p = p.at[_B2_ROW, : b2.shape[1]].set(b2[0])
    p = p.at[_W3_ROW, : w3.shape[0]].set(w3[:, 0])
    p = p.at[_B3_ROW, :].set(jnp.full((LANES,), b3[0, 0], jnp.float32))
    return p


def _cost(n_forwards, batch, in_bytes):
    flops = 2 * n_forwards * batch * (IN_DIM * HID + HID * HID + HID * OUT_DIM)
    bytes_accessed = in_bytes + 4 * (_PACK_ROWS * LANES + n_forwards * batch * OUT_DIM)
    return pl.CostEstimate(flops=flops, transcendentals=0, bytes_accessed=bytes_accessed)


def py_mlp_forward(x, packed_params):
    """Single forward. x: (B, 6) float32 (no padding needed; full-array block)."""
    B, F = x.shape
    return pl.pallas_call(
        mlp_kernel,
        out_shape=jax.ShapeDtypeStruct((B, OUT_DIM), jnp.float32),
        in_specs=[
            pl.BlockSpec((B, F), lambda: (0, 0)),
            pl.BlockSpec((_PACK_ROWS, LANES), lambda: (0, 0)),
        ],
        out_specs=pl.BlockSpec((B, OUT_DIM), lambda: (0, 0)),
        cost_estimate=_cost(1, B, 4 * x.size),
    )(x, packed_params)


def py_mlp_forward_fused(xs, packed_params):
    """N independent forwards in one pallas_call.

    xs: (N, B, 6).  grid=(N,); the packed parameter block's index_map is
    constant so it is DMA'd once and stays VMEM-resident across all steps.
    The parallel batch axis lets v7x use its second TensorCore.
    """
    N, B, F = xs.shape
    return pl.pallas_call(
        mlp_kernel,
        out_shape=jax.ShapeDtypeStruct((N, B, OUT_DIM), jnp.float32),
        grid=(N,),
        in_specs=[
            pl.BlockSpec((None, B, F), lambda i: (i, 0, 0)),          # squeezed leading dim
            pl.BlockSpec((_PACK_ROWS, LANES), lambda i: (0, 0)),      # VMEM-resident params
        ],
        out_specs=pl.BlockSpec((None, B, OUT_DIM), lambda i: (i, 0, 0)),
        compiler_params=pltpu.CompilerParams(dimension_semantics=("parallel",)),
        cost_estimate=_cost(N, B, 4 * xs.size),
    )(xs, packed_params)


def init_params(key):
    """Deterministic init mimicking PyTorch nn.Linear default U(-1/sqrt(fan_in), +1/sqrt(fan_in))."""
    dims = [(IN_DIM, HID), (HID, HID), (HID, OUT_DIM)]
    params = {}
    for idx, (fan_in, fan_out) in enumerate(dims, start=1):
        key, kw, kb = jax.random.split(key, 3)
        bound = 1.0 / jnp.sqrt(jnp.float32(fan_in))
        # weight stored as (in, out) == PyTorch (out, in) transposed
        params[f"w{idx}"] = jax.random.uniform(
            kw, (fan_in, fan_out), jnp.float32, minval=-bound, maxval=bound
        )
        params[f"b{idx}"] = jax.random.uniform(
            kb, (1, fan_out), jnp.float32, minval=-bound, maxval=bound
        )
    return params


def reference_forward(x, params):
    """Plain-JAX reference of the same forward pass (HIGHEST precision matmuls)."""
    h = x
    for i in (1, 2, 3):
        h = _leaky(
            jnp.dot(h, params[f"w{i}"], precision=jax.lax.Precision.HIGHEST)
            + params[f"b{i}"]
        )
    return h


if __name__ == "__main__":
    key = jax.random.PRNGKey(0)
    k_in, k_params, k_many = jax.random.split(key, 3)

    # Input consistent with the module: j_input = random.normal(key, (64, 6))
    x = jax.random.normal(k_in, (64, 6), dtype=jnp.float32)
    params = init_params(k_params)
    packed = pack_params(params)          # built once, reused for every forward

    # --- single-call path ---------------------------------------------------
    out = jax.block_until_ready(py_mlp_forward(x, packed))
    ref = reference_forward(x, params)
    assert out.shape == (64, 1)
    assert jnp.allclose(out, ref, atol=1e-4, rtol=1e-4), "single-call mismatch vs reference"

    # --- fused multi-forward path (amortizes launch + param DMA) ------------
    xs = jax.random.normal(k_many, (4, 64, 6), dtype=jnp.float32)
    outs = jax.block_until_ready(py_mlp_forward_fused(xs, packed))
    refs = jax.vmap(lambda xi: reference_forward(xi, params))(xs)
    assert outs.shape == (4, 64, 1)
    assert jnp.allclose(outs, refs, atol=1e-4, rtol=1e-4), "fused mismatch vs reference"

    print("KERNEL_OK")
</pallas_src>

<mosaic_0001>
module attributes {stable_mosaic.version = 11 : i64} {
  func.func @mlp_kernel(%arg0: memref<64x6xf32, #tpu.memory_space<vmem>>, %arg1: memref<144x128xf32, #tpu.memory_space<vmem>>, %arg2: memref<64x1xf32, #tpu.memory_space<vmem>>) attributes {dimension_semantics = [], scalar_prefetch = 0 : i64, scratch_operands = 0 : i64, tpu.core_type = #tpu.core_type<tc>} {
    %c0 = arith.constant 0 : index
    %c0_0 = arith.constant 0 : index
    %0 = vector.load %arg0[%c0, %c0_0] : memref<64x6xf32, #tpu.memory_space<vmem>>, vector<64x6xf32>
    %c0_1 = arith.constant 0 : index
    %c0_2 = arith.constant 0 : index
    %1 = vector.load %arg1[%c0_1, %c0_2] : memref<144x128xf32, #tpu.memory_space<vmem>>, vector<6x128xf32>
    %c8 = arith.constant 8 : index
    %c0_3 = arith.constant 0 : index
    %2 = vector.load %arg1[%c8, %c0_3] : memref<144x128xf32, #tpu.memory_space<vmem>>, vector<128x128xf32>
    %c136 = arith.constant 136 : index
    %c0_4 = arith.constant 0 : index
    %3 = vector.load %arg1[%c136, %c0_4] : memref<144x128xf32, #tpu.memory_space<vmem>>, vector<1x128xf32>
    %c137 = arith.constant 137 : index
    %c0_5 = arith.constant 0 : index
    %4 = vector.load %arg1[%c137, %c0_5] : memref<144x128xf32, #tpu.memory_space<vmem>>, vector<1x128xf32>
    %c138 = arith.constant 138 : index
    %c0_6 = arith.constant 0 : index
    %5 = vector.load %arg1[%c138, %c0_6] : memref<144x128xf32, #tpu.memory_space<vmem>>, vector<1x128xf32>
    %c139 = arith.constant 139 : index
    %c0_7 = arith.constant 0 : index
    %6 = vector.load %arg1[%c139, %c0_7] : memref<144x128xf32, #tpu.memory_space<vmem>>, vector<1x1xf32>
    %cst = arith.constant dense<0.000000e+00> : vector<64x128xf32>
    %7 = tpu.matmul %0, %1, %cst {dimension_numbers = #tpu.dot_dimension_numbers<[1], [0], [0], [1], [0, 0, 1, 1], [], []>} : vector<64x6xf32>, vector<6x128xf32>, vector<64x128xf32> -> vector<64x128xf32>
    %8 = vector.broadcast %3 : vector<1x128xf32> to vector<64x128xf32>
    %9 = arith.addf %7, %8 : vector<64x128xf32>
    %cst_8 = arith.constant 0.000000e+00 : f32
    %10 = vector.broadcast %cst_8 : f32 to vector<64x128xf32>
    %11 = arith.cmpf oge, %9, %10 : vector<64x128xf32>
    %cst_9 = arith.constant 0.00999999977 : f32
    %12 = vector.broadcast %cst_9 : f32 to vector<64x128xf32>
    %13 = arith.mulf %12, %9 : vector<64x128xf32>
    %14 = arith.select %11, %9, %13 : vector<64x128xi1>, vector<64x128xf32>
    %cst_10 = arith.constant dense<0.000000e+00> : vector<64x128xf32>
    %15 = tpu.matmul %14, %2, %cst_10 {dimension_numbers = #tpu.dot_dimension_numbers<[1], [0], [0], [1], [0, 0, 1, 1], [], []>} : vector<64x128xf32>, vector<128x128xf32>, vector<64x128xf32> -> vector<64x128xf32>
    %16 = vector.broadcast %4 : vector<1x128xf32> to vector<64x128xf32>
    %17 = arith.addf %15, %16 : vector<64x128xf32>
    %cst_11 = arith.constant 0.000000e+00 : f32
    %18 = vector.broadcast %cst_11 : f32 to vector<64x128xf32>
    %19 = arith.cmpf oge, %17, %18 : vector<64x128xf32>
    %cst_12 = arith.constant 0.00999999977 : f32
    %20 = vector.broadcast %cst_12 : f32 to vector<64x128xf32>
    %21 = arith.mulf %20, %17 : vector<64x128xf32>
    %22 = arith.select %19, %17, %21 : vector<64x128xi1>, vector<64x128xf32>
    %23 = vector.broadcast %5 : vector<1x128xf32> to vector<64x128xf32>
    %24 = arith.mulf %22, %23 : vector<64x128xf32>
    %cst_13 = arith.constant dense<0.000000e+00> : vector<64xf32>
    %25 = vector.multi_reduction <add>, %24, %cst_13 [1] : vector<64x128xf32> to vector<64xf32>
    %26 = vector.shape_cast %25 : vector<64xf32> to vector<64x1xf32>
    %27 = vector.broadcast %6 : vector<1x1xf32> to vector<64x1xf32>
    %28 = arith.addf %26, %27 : vector<64x1xf32>
    %cst_14 = arith.constant 0.000000e+00 : f32
    %29 = vector.broadcast %cst_14 : f32 to vector<64x1xf32>
    %30 = arith.cmpf oge, %28, %29 : vector<64x1xf32>
    %cst_15 = arith.constant 0.00999999977 : f32
    %31 = vector.broadcast %cst_15 : f32 to vector<64x1xf32>
    %32 = arith.mulf %31, %28 : vector<64x1xf32>
    %33 = arith.select %30, %28, %32 : vector<64x1xi1>, vector<64x1xf32>
    %c0_16 = arith.constant 0 : index
    %c0_17 = arith.constant 0 : index
    %34 = vector.load %arg2[%c0_16, %c0_17] : memref<64x1xf32, #tpu.memory_space<vmem>>, vector<64x1xf32>
    tpu.vector_store %arg2[%c0_16, %c0_17], %33 {strides = array<i32>} : memref<64x1xf32, #tpu.memory_space<vmem>>, vector<64x1xf32>,
    return
  }
}

</mosaic_0001>

<bundles_post_ra>
// kernel: tpu_custom_call.1
= control target key start
LH: loop header
LB: loop body
LE: loop exit
PB: predicated region body
PF: predicated region fallthrough
CT: control target
= control target key end

     0   :  { %7 = vsyncpa [#allocation3], 0  ;;  %s588_s9 = smov [#allocation2]   ;;  %s673_s0 = inlined_call_operand.vmem [shape: f32[64,6], index: 0, kind: input, shape index: {}]   ;;  %s674_s1 = inlined_call_operand.hbm [shape: f32[144,128], index: 1, kind: input, shape index: {}]   ;;  %s675_s2 = inlined_call_operand.vmem [shape: f32[64,1], index: 2, kind: output, shape index: {}]  }
   0x1   :  { %s15_s10 = sshll.u32 %s588_s9, 4  ;;  %s16_s10 = int_to_ptr.vmem [resolvable:$true] %s15_s10 }
   0x2   :  { %s574_s11 = scalar_lea.vmem %s16_s10, 2304  ;;  %p579_p1 = scmp.lt.s32.totalorder %s16_s10, %s16_s10 }
   0x3   :  { %p575_p0 = scmp.ne.s32.totalorder %s16_s10, %s574_s11  ;;  %p580_p2 = scmp.lt.s32.totalorder %s574_s11, %s574_s11 }
   0x5   :  { %p581_p3 = por %p580_p2, %p579_p1 }
   0x7   :  { %p582_p4 = pnand %p581_p3, %p575_p0 }
   0x9   :  { %585 = shalt.err (!%p582_p4)
}
   0xa   :  { %s589_s12 = smov 128   ;;  %s590_s13 = smov 8  }
   0xb   :  { %21 = dma.hbm_to_vmem [thread:$0]  %s674_s1, 2304, %s16_s10, [#allocation3], %s589_s12, %s589_s12, %s590_s13  }
   0xc   :  { %586 = dma.done.wait [#allocation3], 2304  }
   0xd   :  { %587 = vsyncadd [#allocation3], 4294964992  ;;  %vm83_vm0 = vcmask 1045504   ;;  %vm58_vm1 = vcmask 48128   ;;  %v33_v0 = vld [vmem:[#allocation2] sm:$0x3f] }
   0xe   :  { %v25_v1 = vld [vmem:[%s673_s0] sm:$0xff]  ;;  %v26_v2 = vld [vmem:[%s673_s0 + $0x8] sm:$0xff]  ;;  %473 = vmatprep.subr.msk.mxu0 %vm83_vm0, %v33_v0  ;;  %v27_v3 = vld [vmem:[%s673_s0 + $0x10] sm:$0xff] }
   0xf   :  { %475 = vmatprep.mubr.msk.f32.mxu0 %vm58_vm1, %v25_v1  ;;  %474 = vmatpush3.msk.msra.mxu0 %vm83_vm0, %v33_v0  ;;  %v49_v4 = vld [vmem:[#allocation2 + $0x80] sm:$0xff]  ;;  %v48_v5 = vld [vmem:[#allocation2 + $0x78] sm:$0xff]  ;;  %v47_v8 = vld [vmem:[#allocation2 + $0x70] sm:$0xff] }
  0x10   :  { %476 = vmatmul.mubr.msk.f32.vlgmr.msra.gmra.mxu0 %vm58_vm1, %v26_v2  ;;  %v28_v6 = vld [vmem:[%s673_s0 + $0x18] sm:$0xff]  ;;  %487 = vmatprep.subr.mxu0 %v49_v4  ;;  %v29_v7 = vld [vmem:[%s673_s0 + $0x20] sm:$0xff]  ;;  %v30_v9 = vld [vmem:[%s673_s0 + $0x28] sm:$0xff] }
  0x11   :  { %478 = vmatprep.mubr.msk.f32.mxu0 %vm58_vm1, %v27_v3  ;;  %488 = vmatpush3.msra.mxu0 %v49_v4  ;;  %v46_v10 = vld [vmem:[#allocation2 + $0x68] sm:$0xff]  ;;  %v31_v11 = vld [vmem:[%s673_s0 + $0x30] sm:$0xff]  ;;  %v45_v12 = vld [vmem:[#allocation2 + $0x60] sm:$0xff] }
  0x12   :  { %531 = vmatprep.subr.mxu1 %v49_v4  ;;  %489 = vmatprep.subr.mxu0 %v48_v5  ;;  %v32_v13 = vld [vmem:[%s673_s0 + $0x38] sm:$0xff]  ;;  %v43_v15 = vld [vmem:[#allocation2 + $0x50] sm:$0xff]  ;;  %v42_v16 = vld [vmem:[#allocation2 + $0x48] sm:$0xff] }
  0x13   :  { %547 = vmatpush3.msra.mxu1 %v49_v4  ;;  %490 = vmatpush3.msra.mxu0 %v48_v5  ;;  %v44_v14 = vld [vmem:[#allocation2 + $0x58] sm:$0xff]  ;;  %v41_v17 = vld [vmem:[#allocation2 + $0x40] sm:$0xff]  ;;  %v39_v19 = vld [vmem:[#allocation2 + $0x30] sm:$0xff] }
  0x14   :  { %479 = vmatmul.mubr.msk.f32.gmra.mxu0 %vm58_vm1, %v28_v6  ;;  %532 = vmatprep.subr.mxu1 %v48_v5  ;;  %v40_v18 = vld [vmem:[#allocation2 + $0x38] sm:$0xff]  ;;  %v38_v20 = vld [vmem:[#allocation2 + $0x28] sm:$0xff]  ;;  %v37_v21 = vld [vmem:[#allocation2 + $0x20] sm:$0xff] }
  0x15   :  { %481 = vmatprep.mubr.msk.f32.mxu0 %vm58_vm1, %v29_v7  ;;  %491 = vmatprep.subr.mxu0 %v47_v8  ;;  %v36_v22 = vld [vmem:[#allocation2 + $0x18] sm:$0xff]  ;;  %v35_v23 = vld [vmem:[#allocation2 + $0x10] sm:$0xff]  ;;  %v34_v24 = vld [vmem:[#allocation2 + $0x8] sm:$0xff] }
  0x16   :  { %548 = vmatpush3.msra.mxu1 %v48_v5  ;;  %492 = vmatpush3.msra.mxu0 %v47_v8  ;;  %v427_v25 = vld [vmem:[#allocation2 + $0x88] ss:$0 sm:$0xff]  ;;  %v437_v58 = vld [vmem:[#allocation2 + $0x89] ss:$0 sm:$0xff]  ;;  %v438_v0 = vld [vmem:[#allocation2 + $0x8a] ss:$0 sm:$0xff] }
  0x17   :  { %533 = vmatprep.subr.mxu1 %v47_v8  ;;  %493 = vmatprep.subr.mxu0 %v46_v10 }
  0x18   :  { %482 = vmatmul.mubr.msk.f32.gmra.mxu0 %vm58_vm1, %v30_v9  ;;  %549 = vmatpush3.msra.mxu1 %v47_v8 }
  0x19   :  { %484 = vmatprep.mubr.msk.f32.mxu0 %vm58_vm1, %v31_v11  ;;  %494 = vmatpush3.msra.mxu0 %v46_v10 }
  0x1a   :  { %495 = vmatprep.subr.mxu0 %v45_v12  ;;  %534 = vmatprep.subr.mxu1 %v46_v10 }
  0x1b   :  { %496 = vmatpush3.msra.mxu0 %v45_v12  ;;  %550 = vmatpush3.msra.mxu1 %v46_v10 }
  0x1c   :  { %485 = vmatmul.mubr.msk.f32.gmra.mxu0 %vm58_vm1, %v32_v13  ;;  %497 = vmatprep.subr.mxu0 %v44_v14 }
  0x1d   :  { %498 = vmatpush3.msra.mxu0 %v44_v14  ;;  %535 = vmatprep.subr.mxu1 %v45_v12 }
  0x1e   :  { %499 = vmatprep.subr.mxu0 %v43_v15  ;;  %551 = vmatpush3.msra.mxu1 %v45_v12 }
  0x1f   :  { %500 = vmatpush3.msra.mxu0 %v43_v15  ;;  %536 = vmatprep.subr.mxu1 %v44_v14 }
  0x20   :  { %501 = vmatprep.subr.mxu0 %v42_v16  ;;  %552 = vmatpush3.msra.mxu1 %v44_v14 }
  0x21   :  { %502 = vmatpush3.msra.mxu0 %v42_v16  ;;  %537 = vmatprep.subr.mxu1 %v43_v15 }
  0x22   :  { %503 = vmatprep.subr.mxu0 %v41_v17  ;;  %553 = vmatpush3.msra.mxu1 %v43_v15 }
  0x23   :  { %504 = vmatpush3.msra.mxu0 %v41_v17  ;;  %538 = vmatprep.subr.mxu1 %v42_v16 }
  0x24   :  { %505 = vmatprep.subr.mxu0 %v40_v18  ;;  %554 = vmatpush3.msra.mxu1 %v42_v16 }
  0x25   :  { %506 = vmatpush3.msra.mxu0 %v40_v18  ;;  %539 = vmatprep.subr.mxu1 %v41_v17 }
  0x26   :  { %507 = vmatprep.subr.mxu0 %v39_v19  ;;  %555 = vmatpush3.msra.mxu1 %v41_v17 }
  0x27   :  { %508 = vmatpush3.msra.mxu0 %v39_v19  ;;  %540 = vmatprep.subr.mxu1 %v40_v18 }
  0x28   :  { %509 = vmatprep.subr.mxu0 %v38_v20  ;;  %556 = vmatpush3.msra.mxu1 %v40_v18 }
  0x29   :  { %510 = vmatpush3.msra.mxu0 %v38_v20  ;;  %541 = vmatprep.subr.mxu1 %v39_v19 }
  0x2a   :  { %557 = vmatpush3.msra.mxu1 %v39_v19  ;;  %511 = vmatprep.subr.mxu0 %v37_v21 }
  0x2b   :  { %542 = vmatprep.subr.mxu1 %v38_v20  ;;  %512 = vmatpush3.msra.mxu0 %v37_v21 }
  0x2c   :  { %558 = vmatpush3.msra.mxu1 %v38_v20  ;;  %513 = vmatprep.subr.mxu0 %v36_v22 }
  0x2d   :  { %543 = vmatprep.subr.mxu1 %v37_v21  ;;  %514 = vmatpush3.msra.mxu0 %v36_v22 }
  0x2e   :  { %559 = vmatpush3.msra.mxu1 %v37_v21  ;;  %515 = vmatprep.subr.mxu0 %v35_v23 }
  0x2f   :  { %544 = vmatprep.subr.mxu1 %v36_v22  ;;  %516 = vmatpush3.msra.mxu0 %v35_v23 }
  0x30   :  { %560 = vmatpush3.msra.mxu1 %v36_v22  ;;  %517 = vmatprep.subr.mxu0 %v34_v24 }
  0x31   :  { %545 = vmatprep.subr.mxu1 %v35_v23  ;;  %518 = vmatpush3.msra.mxu0 %v34_v24 }
  0x32   :  { %561 = vmatpush3.msra.mxu1 %v35_v23 }
  0x33   :  { %546 = vmatprep.subr.mxu1 %v34_v24 }
  0x34   :  { %562 = vmatpush3.msra.mxu1 %v34_v24 }
  0xd0   :  { %v477_v26 = vpop.f32.mrf.mxu0 }
  0xd1   :  { %v159_v27 = vadd.f32 %v477_v26, %v427_v25 }
  0xd2   :  { %v153_v28 = vpop.f32.mrf.mxu0 }
  0xd3   :  { %v154_v29 = vadd.f32 %v427_v25, %v153_v28  ;;  %v201_v30 = vmul.f32 0.01, %v159_v27  ;;  %vm193_vm2 = vcmp.ge.f32.partialorder %v159_v27, 0.0 }
  0xd4   :  { %v480_v31 = vpop.f32.mrf.mxu0 }
  0xd5   :  { %v200_v32 = vmul.f32 0.01, %v154_v29  ;;  %v169_v33 = vadd.f32 %v480_v31, %v427_v25  ;;  %vm192_vm3 = vcmp.ge.f32.partialorder %v154_v29, 0.0  ;;  %v209_v37 = vsel %vm193_vm2, %v159_v27, %v201_v30 }
  0xd6   :  { %v163_v34 = vpop.f32.mrf.mxu0  ;;  %vm413_vm2 = vcmask 7168  }
  0xd7   :  { %v164_v35 = vadd.f32 %v427_v25, %v163_v34  ;;  %v208_v36 = vsel %vm192_vm3, %v154_v29, %v200_v32  ;;  %v203_v38 = vmul.f32 0.01, %v169_v33  ;;  %vm195_vm5 = vcmp.ge.f32.partialorder %v169_v33, 0.0 }
  0xd8   :  { %v483_v39 = vpop.f32.mrf.mxu0  ;;  %519 = vmatprep.mubr.f32.mxu0 %v208_v36  ;;  %v439_v36 = vld [vmem:[#allocation2 + $0x8b] ss:$0 sm:$0xff] }
  0xd9   :  { %v179_v40 = vadd.f32 %v483_v39, %v427_v25  ;;  %520 = vmatmul.mubr.f32.vlgmr.msra.gmra.mxu0 %v209_v37  ;;  %vm194_vm4 = vcmp.ge.f32.partialorder %v164_v35, 0.0  ;;  %v202_v41 = vmul.f32 0.01, %v164_v35  ;;  %v211_v47 = vsel %vm195_vm5, %v169_v33, %v203_v38 }
  0xda   :  { %v173_v42 = vpop.f32.mrf.mxu0 }
  0xdb   :  { %v174_v43 = vadd.f32 %v427_v25, %v173_v42  ;;  %v210_v44 = vsel %vm194_vm4, %v164_v35, %v202_v41  ;;  %v205_v45 = vmul.f32 0.01, %v179_v40  ;;  %vm197_vm7 = vcmp.ge.f32.partialorder %v179_v40, 0.0 }
  0xdc   :  { %v486_v46 = vpop.f32.mrf.mxu0  ;;  %522 = vmatprep.mubr.f32.mxu1 %v210_v44 }
  0xdd   :  { %v204_v48 = vmul.f32 0.01, %v174_v43  ;;  %v189_v49 = vadd.f32 %v486_v46, %v427_v25  ;;  %523 = vmatmul.mubr.f32.vlgmr.msra.gmra.mxu1 %v211_v47  ;;  %vm196_vm6 = vcmp.ge.f32.partialorder %v174_v43, 0.0  ;;  %v213_v54 = vsel %vm197_vm7, %v179_v40, %v205_v45 }
  0xde   :  { %v183_v50 = vpop.f32.mrf.mxu0 }
  0xdf   :  { %v184_v51 = vadd.f32 %v427_v25, %v183_v50  ;;  %v212_v52 = vsel %vm196_vm6, %v174_v43, %v204_v48  ;;  %v207_v53 = vmul.f32 0.01, %v189_v49  ;;  %vm199_vm9 = vcmp.ge.f32.partialorder %v189_v49, 0.0 }
  0xe0   :  { %525 = vmatprep.mubr.f32.mxu1 %v212_v52 }
  0xe1   :  { %v206_v55 = vmul.f32 0.01, %v184_v51  ;;  %526 = vmatmul.mubr.f32.gmra.mxu1 %v213_v54  ;;  %vm198_vm8 = vcmp.ge.f32.partialorder %v184_v51, 0.0  ;;  %v215_v57 = vsel %vm199_vm9, %v189_v49, %v207_v53 }
  0xe3   :  { %v214_v56 = vsel %vm198_vm8, %v184_v51, %v206_v55 }
  0xe4   :  { %528 = vmatprep.mubr.f32.mxu1 %v214_v56 }
  0xe5   :  { %529 = vmatmul.mubr.f32.gmra.mxu1 %v215_v57 }
 0x199   :  { %v521_v59 = vpop.f32.mrf.mxu0 }
 0x19a   :  { %v292_v60 = vadd.f32 %v521_v59, %v437_v58 }
 0x19b   :  { %v286_v61 = vpop.f32.mrf.mxu0 }
 0x19c   :  { %v334_v62 = vmul.f32 0.01, %v292_v60  ;;  %v287_v63 = vadd.f32 %v437_v58, %v286_v61  ;;  %vm326_vm10 = vcmp.ge.f32.partialorder %v292_v60, 0.0 }
 0x19d   :  { %v524_v1 = vpop.f32.mrf.mxu1 }
 0x19e   :  { %v333_v2 = vmul.f32 0.01, %v287_v63  ;;  %v302_v3 = vadd.f32 %v524_v1, %v437_v58  ;;  %v342_v4 = vsel %vm326_vm10, %v292_v60, %v334_v62  ;;  %vm325_vm11 = vcmp.ge.f32.partialorder %v287_v63, 0.0 }
 0x19f   :  { %v296_v5 = vpop.f32.mrf.mxu1  ;;  %v354_v6 = vmul.f32 %v438_v0, %v342_v4 }
 0x1a0   :  { %v336_v7 = vmul.f32 0.01, %v302_v3  ;;  %v297_v8 = vadd.f32 %v437_v58, %v296_v5  ;;  %vm328_vm12 = vcmp.ge.f32.partialorder %v302_v3, 0.0  ;;  %v341_v9 = vsel %vm325_vm11, %v287_v63, %v333_v2 }
 0x1a1   :  { %v527_v10 = vpop.f32.mrf.mxu1  ;;  %363 = vadd.xlane.f32.xlu0 %v354_v6  ;;  %v353_v16 = vmul.f32 %v438_v0, %v341_v9 }
 0x1a2   :  { %v335_v11 = vmul.f32 0.01, %v297_v8  ;;  %v312_v12 = vadd.f32 %v527_v10, %v437_v58  ;;  %v344_v13 = vsel %vm328_vm12, %v302_v3, %v336_v7  ;;  %vm327_vm13 = vcmp.ge.f32.partialorder %v297_v8, 0.0 }
 0x1a3   :  { %v306_v14 = vpop.f32.mrf.mxu1  ;;  %v356_v15 = vmul.f32 %v438_v0, %v344_v13 }
 0x1a4   :  { %v338_v17 = vmul.f32 0.01, %v312_v12  ;;  %v307_v18 = vadd.f32 %v437_v58, %v306_v14  ;;  %v343_v19 = vsel %vm327_vm13, %v297_v8, %v335_v11  ;;  %vm330_vm14 = vcmp.ge.f32.partialorder %v312_v12, 0.0 }
 0x1a5   :  { %367 = vadd.xlane.f32.xlu1 %v356_v15  ;;  %v530_v20 = vpop.f32.mrf.mxu1  ;;  %361 = vadd.xlane.f32.xlu0 %v353_v16  ;;  %v355_v24 = vmul.f32 %v438_v0, %v343_v19 }
 0x1a6   :  { %v337_v21 = vmul.f32 0.01, %v307_v18  ;;  %v322_v22 = vadd.f32 %v530_v20, %v437_v58  ;;  %vm329_vm15 = vcmp.ge.f32.partialorder %v307_v18, 0.0  ;;  %v346_v28 = vsel %vm330_vm14, %v312_v12, %v338_v17 }
 0x1a7   :  { %v316_v23 = vpop.f32.mrf.mxu1  ;;  %v358_v31 = vmul.f32 %v438_v0, %v346_v28 }
 0x1a8   :  { %v340_v25 = vmul.f32 0.01, %v322_v22  ;;  %v317_v26 = vadd.f32 %v437_v58, %v316_v23  ;;  %v345_v27 = vsel %vm329_vm15, %v307_v18, %v337_v21  ;;  %vm332_vm0 = vcmp.ge.f32.partialorder %v322_v22, 0.0 }
 0x1a9   :  { %365 = vadd.xlane.f32.xlu1 %v355_v24  ;;  %v357_v29 = vmul.f32 %v438_v0, %v345_v27 }
 0x1aa   :  { %v339_v30 = vmul.f32 0.01, %v317_v26  ;;  %vm331_vm1 = vcmp.ge.f32.partialorder %v317_v26, 0.0  ;;  %v348_v33 = vsel %vm332_vm0, %v322_v22, %v340_v25 }
 0x1ab   :  { %369 = vadd.xlane.f32.xlu0 %v357_v29  ;;  %v360_v35 = vmul.f32 %v438_v0, %v348_v33 }
 0x1ac   :  { %v347_v32 = vsel %vm331_vm1, %v317_v26, %v339_v30 }
 0x1ad   :  { %371 = vadd.xlane.f32.xlu1 %v358_v31  ;;  %v359_v34 = vmul.f32 %v438_v0, %v347_v32 }
 0x1af   :  { %373 = vadd.xlane.f32.xlu0 %v359_v34 }
 0x1b1   :  { %375 = vadd.xlane.f32.xlu1 %v360_v35 }
 0x22a   :  { %v364_v37 = vpop.xlane.xlu0 %363 }
 0x22b   :  { %v382_v38 = vadd.f32 %v439_v36, %v364_v37 }
 0x22d   :  { %vm390_vm3 = vcmp.ge.f32.partialorder %v382_v38, 0.0  ;;  %v398_v39 = vmul.f32 0.01, %v382_v38 }
 0x22e   :  { %v368_v40 = vpop.xlane.xlu1 %367  ;;  %v362_v41 = vpop.xlane.xlu0 %361 }
 0x22f   :  { %v406_v42 = vsel %vm390_vm3, %v382_v38, %v398_v39  ;;  %v384_v43 = vadd.f32 %v439_v36, %v368_v40  ;;  %v381_v44 = vadd.f32 %v439_v36, %v362_v41 }
 0x230   :  { %415 = vst.msk [vmem:[%s675_s2 + $0x8] sm:$0xff] %vm413_vm2, %v406_v42 }
 0x231   :  { %vm392_vm4 = vcmp.ge.f32.partialorder %v384_v43, 0.0  ;;  %v400_v45 = vmul.f32 0.01, %v384_v43  ;;  %vm389_vm5 = vcmp.ge.f32.partialorder %v381_v44, 0.0  ;;  %v397_v46 = vmul.f32 0.01, %v381_v44 }
 0x232   :  { %v366_v47 = vpop.xlane.xlu1 %365 }
 0x233   :  { %v408_v48 = vsel %vm392_vm4, %v384_v43, %v400_v45  ;;  %v405_v49 = vsel %vm389_vm5, %v381_v44, %v397_v46  ;;  %v383_v50 = vadd.f32 %v439_v36, %v366_v47 }
 0x234   :  { %417 = vst.msk [vmem:[%s675_s2 + $0x18] sm:$0xff] %vm413_vm2, %v408_v48  ;;  %414 = vst.msk [vmem:[%s675_s2] sm:$0xff] %vm413_vm2, %v405_v49  ;;  %v370_v51 = vpop.xlane.xlu0 %369 }
 0x235   :  { %vm391_vm6 = vcmp.ge.f32.partialorder %v383_v50, 0.0  ;;  %v399_v52 = vmul.f32 0.01, %v383_v50  ;;  %v385_v53 = vadd.f32 %v439_v36, %v370_v51 }
 0x236   :  { %v372_v54 = vpop.xlane.xlu1 %371 }
 0x237   :  { %v407_v55 = vsel %vm391_vm6, %v383_v50, %v399_v52  ;;  %vm393_vm7 = vcmp.ge.f32.partialorder %v385_v53, 0.0  ;;  %v401_v56 = vmul.f32 0.01, %v385_v53  ;;  %v386_v57 = vadd.f32 %v439_v36, %v372_v54 }
 0x238   :  { %416 = vst.msk [vmem:[%s675_s2 + $0x10] sm:$0xff] %vm413_vm2, %v407_v55  ;;  %v374_v58 = vpop.xlane.xlu0 %373 }
 0x239   :  { %v409_v59 = vsel %vm393_vm7, %v385_v53, %v401_v56  ;;  %vm394_vm8 = vcmp.ge.f32.partialorder %v386_v57, 0.0  ;;  %v402_v60 = vmul.f32 0.01, %v386_v57  ;;  %v387_v61 = vadd.f32 %v439_v36, %v374_v58 }
 0x23a   :  { %418 = vst.msk [vmem:[%s675_s2 + $0x20] sm:$0xff] %vm413_vm2, %v409_v59  ;;  %v376_v62 = vpop.xlane.xlu1 %375 }
 0x23b   :  { %v410_v63 = vsel %vm394_vm8, %v386_v57, %v402_v60  ;;  %vm395_vm9 = vcmp.ge.f32.partialorder %v387_v61, 0.0  ;;  %v403_v0 = vmul.f32 0.01, %v387_v61  ;;  %v388_v1 = vadd.f32 %v439_v36, %v376_v62 }
 0x23c   :  { %419 = vst.msk [vmem:[%s675_s2 + $0x28] sm:$0xff] %vm413_vm2, %v410_v63 }
 0x23d   :  { %v411_v2 = vsel %vm395_vm9, %v387_v61, %v403_v0  ;;  %vm396_vm10 = vcmp.ge.f32.partialorder %v388_v1, 0.0  ;;  %v404_v3 = vmul.f32 0.01, %v388_v1 }
 0x23e   :  { %420 = vst.msk [vmem:[%s675_s2 + $0x30] sm:$0xff] %vm413_vm2, %v411_v2 }
 0x23f   :  { %v412_v4 = vsel %vm396_vm10, %v388_v1, %v404_v3 }
 0x240   :  { %421 = vst.msk [vmem:[%s675_s2 + $0x38] sm:$0xff] %vm413_vm2, %v412_v4 }
 0x241   :  { %426 = vsyncpa [#allocation3], 1 }

</bundles_post_ra>
